<compile_context>
chip_gen: v7x
topology: tpu7x:2x2x1
jax: 0.10.0
libtpu: 0.0.40
codegen_flags: <defaults>
</compile_context>

<pallas_src>
import functools

import jax
import jax.numpy as jnp
from jax.experimental import pallas as pl
from jax.experimental.pallas import tpu as pltpu


def _round_up(x, m):
    return ((x + m - 1) // m) * m


def _dqn_kernel(x_ref, w1_ref, b1_ref, w2_ref, b2_ref, w3_ref, b3_ref,
                w4_ref, b4_ref, out_ref, *, action_dim, atoms_num):
    # fc1 + relu
    x = x_ref[...]
    h1 = jnp.dot(x, w1_ref[...], preferred_element_type=jnp.float32) + b1_ref[...]
    h1 = jnp.maximum(h1, 0.0)
    # fc2 + relu
    h2 = jnp.dot(h1, w2_ref[...], preferred_element_type=jnp.float32) + b2_ref[...]
    h2 = jnp.maximum(h2, 0.0)
    # noisy1 (effective weights) + relu
    h3 = jnp.dot(h2, w3_ref[...], preferred_element_type=jnp.float32) + b3_ref[...]
    h3 = jnp.maximum(h3, 0.0)
    # noisy2 head: single fused matmul over all actions (lane-dense N = A*atoms)
    logits = jnp.dot(h3, w4_ref[...], preferred_element_type=jnp.float32) + b4_ref[...]
    # per-action softmax over the 51-atom slices; build the full slab in registers
    # and do ONE lane-dense store (avoids 4 masked 51-wide store epilogues)
    parts = []
    for a in range(action_dim):  # static, small (action_dim = 4)
        la = logits[:, a * atoms_num:(a + 1) * atoms_num]
        m = jnp.max(la, axis=-1, keepdims=True)
        e = jnp.exp(la - m)
        s = jnp.sum(e, axis=-1, keepdims=True)
        parts.append(e * pl.reciprocal(s, approx=False))
    out_ref[...] = jnp.concatenate(parts, axis=-1)


def categorical_dqn_forward(obs, params, action_dim, atoms_num):
    """Fused forward: fc1 -> relu -> fc2 -> relu -> noisy1 -> relu -> noisy2 -> softmax."""
    B, obs_dim = obs.shape
    (w1, b1, w2, b2, w3, b3, w4, b4) = params
    out_dim = action_dim * atoms_num

    # batch tile: multiple of 8 sublanes, up to 128 rows per grid step
    TB = 128 if B >= 128 else _round_up(B, 8)
    B_pad = _round_up(B, TB)
    if B_pad != B:
        obs = jnp.pad(obs, ((0, B_pad - B), (0, 0)))
    grid = (B_pad // TB,)

    batch_map = lambda i: (i, 0)     # obs / out tiled over the batch axis
    const_map = lambda i: (0, 0)     # weights stay VMEM-resident (no re-DMA)

    in_specs = [
        pl.BlockSpec((TB, obs_dim), batch_map),
        pl.BlockSpec(w1.shape, const_map),
        pl.BlockSpec(b1.shape, const_map),
        pl.BlockSpec(w2.shape, const_map),
        pl.BlockSpec(b2.shape, const_map),
        pl.BlockSpec(w3.shape, const_map),
        pl.BlockSpec(b3.shape, const_map),
        pl.BlockSpec(w4.shape, const_map),
        pl.BlockSpec(b4.shape, const_map),
    ]
    out_specs = pl.BlockSpec((TB, out_dim), batch_map)
    out_shape = jax.ShapeDtypeStruct((B_pad, out_dim), jnp.float32)

    flops = 2 * B_pad * (obs_dim * 128 + 128 * 128 + 128 * 512 + 512 * out_dim)
    bytes_accessed = 4 * (obs.size + w1.size + b1.size + w2.size + b2.size
                          + w3.size + b3.size + w4.size + b4.size + B_pad * out_dim)
    cost = pl.CostEstimate(flops=flops,
                           transcendentals=B_pad * out_dim,
                           bytes_accessed=bytes_accessed)

    kernel = functools.partial(_dqn_kernel, action_dim=action_dim, atoms_num=atoms_num)
    probs_flat = pl.pallas_call(
        kernel,
        out_shape=out_shape,
        grid=grid,
        in_specs=in_specs,
        out_specs=out_specs,
        compiler_params=pltpu.CompilerParams(
            dimension_semantics=("parallel",),   # shard batch tiles across TCs on v7x
            vmem_limit_bytes=16 << 20),
        cost_estimate=cost,
    )(obs, w1, b1, w2, b2, w3, b3, w4, b4)

    # strip batch padding, reshape to (B, action_dim, atoms) in the wrapper (free)
    return probs_flat[:B].reshape(B, action_dim, atoms_num)


def _scale_noise(key, size):
    n = jax.random.normal(key, (size,), dtype=jnp.float32)
    return jnp.sign(n) * jnp.sqrt(jnp.abs(n))


def make_params(key, obs_dim, action_dim, atoms_num, std_init=0.4):
    """Deterministic parameter construction mirroring the PyTorch module's shapes/init."""
    ks = jax.random.split(key, 12)
    h1, h2, h3 = 128, 128, 512
    out_dim = action_dim * atoms_num

    def uniform(k, shape, bound):
        return jax.random.uniform(k, shape, jnp.float32, -bound, bound)

    # fc1, fc2 (standard nn.Linear-style uniform init); stored as (in, out)
    w1 = uniform(ks[0], (obs_dim, h1), 1.0 / jnp.sqrt(obs_dim))
    b1 = uniform(ks[1], (1, h1), 1.0 / jnp.sqrt(obs_dim))
    w2 = uniform(ks[2], (h1, h2), 1.0 / jnp.sqrt(h1))
    b2 = uniform(ks[3], (1, h2), 1.0 / jnp.sqrt(h1))

    # noisy1: effective training-mode weights  w = mu + sigma * eps  (glue, elementwise)
    mu3_w = uniform(ks[4], (h2, h3), 1.0 / jnp.sqrt(h2))
    mu3_b = uniform(ks[5], (1, h3), 1.0 / jnp.sqrt(h2))
    eps_in3 = _scale_noise(ks[6], h2)
    eps_out3 = _scale_noise(ks[7], h3)
    sig3_w = jnp.full((h2, h3), std_init / jnp.sqrt(h2), jnp.float32)
    sig3_b = jnp.full((1, h3), std_init / jnp.sqrt(h3), jnp.float32)
    w3 = mu3_w + sig3_w * (eps_in3[:, None] * eps_out3[None, :])
    b3 = mu3_b + sig3_b * _scale_noise(ks[7], h3)[None, :]

    # noisy2 head, stored FLAT and lane-dense: (512, action_dim*atoms) / (1, action_dim*atoms)
    mu4_w = uniform(ks[8], (h3, out_dim), 1.0 / jnp.sqrt(h3))
    mu4_b = uniform(ks[9], (1, out_dim), 1.0 / jnp.sqrt(h3))
    eps_in4 = _scale_noise(ks[10], h3)
    eps_out4 = _scale_noise(ks[11], out_dim)
    sig4_w = jnp.full((h3, out_dim), std_init / jnp.sqrt(h3), jnp.float32)
    sig4_b = jnp.full((1, out_dim), std_init / jnp.sqrt(out_dim), jnp.float32)
    w4 = mu4_w + sig4_w * (eps_in4[:, None] * eps_out4[None, :])
    b4 = mu4_b + sig4_b * _scale_noise(ks[11], out_dim)[None, :]
    return (w1, b1, w2, b2, w3, b3, w4, b4)


def reference_forward(obs, params, action_dim, atoms_num):
    (w1, b1, w2, b2, w3, b3, w4, b4) = params
    x = jnp.maximum(obs @ w1 + b1, 0.0)
    x = jnp.maximum(x @ w2 + b2, 0.0)
    x = jnp.maximum(x @ w3 + b3, 0.0)
    logits = x @ w4 + b4
    probs = jax.nn.softmax(logits.reshape(-1, atoms_num), axis=1)
    return probs.reshape(-1, action_dim, atoms_num)


if __name__ == "__main__":
    key = jax.random.PRNGKey(0)
    obs_dim, action_dim, atoms_num = 16, 4, 51
    v_min, v_max = -10.0, 10.0  # only used by act(), not the forward pass
    B = 2

    k_obs, k_par = jax.random.split(key)
    obs = jax.random.normal(k_obs, (B, obs_dim), dtype=jnp.float32)
    params = make_params(k_par, obs_dim, action_dim, atoms_num)

    fwd = jax.jit(functools.partial(categorical_dqn_forward,
                                    action_dim=action_dim, atoms_num=atoms_num))
    out = fwd(obs, params)
    out = jax.block_until_ready(out)

    ref = reference_forward(obs, params, action_dim, atoms_num)
    assert out.shape == (B, action_dim, atoms_num)
    assert jnp.allclose(jnp.sum(out, axis=-1), 1.0, atol=1e-5)
    assert jnp.allclose(out, ref, atol=1e-5, rtol=1e-5)
    # TODO(synk): on v6e/v7x, cast matmul operands to bf16 (keep f32 accumulation and
    # f32 vector math) for MXU peak; left in f32 here to preserve the 1e-5 check.
    print("KERNEL_OK")
</pallas_src>

<mosaic_0001>
module attributes {stable_mosaic.version = 11 : i64} {
  func.func @_dqn_kernel(%arg0: i32, %arg1: memref<8x16xf32, #tpu.memory_space<vmem>>, %arg2: memref<16x128xf32, #tpu.memory_space<vmem>>, %arg3: memref<1x128xf32, #tpu.memory_space<vmem>>, %arg4: memref<128x128xf32, #tpu.memory_space<vmem>>, %arg5: memref<1x128xf32, #tpu.memory_space<vmem>>, %arg6: memref<128x512xf32, #tpu.memory_space<vmem>>, %arg7: memref<1x512xf32, #tpu.memory_space<vmem>>, %arg8: memref<512x204xf32, #tpu.memory_space<vmem>>, %arg9: memref<1x204xf32, #tpu.memory_space<vmem>>, %arg10: memref<8x204xf32, #tpu.memory_space<vmem>>) attributes {dimension_semantics = [#tpu.dimension_semantics<parallel>], iteration_bounds = array<i64: 1>, scalar_prefetch = 0 : i64, scratch_operands = 0 : i64, tpu.core_type = #tpu.core_type<tc>, window_params = [{transform_indices = @transform_0, window_bounds = array<i64: 8, 16>}, {pipeline_mode = #tpu.pipeline_mode<synchronous>, transform_indices = @transform_1, window_bounds = array<i64: 16, 128>}, {pipeline_mode = #tpu.pipeline_mode<synchronous>, transform_indices = @transform_2, window_bounds = array<i64: 1, 128>}, {pipeline_mode = #tpu.pipeline_mode<synchronous>, transform_indices = @transform_3, window_bounds = array<i64: 128, 128>}, {pipeline_mode = #tpu.pipeline_mode<synchronous>, transform_indices = @transform_4, window_bounds = array<i64: 1, 128>}, {pipeline_mode = #tpu.pipeline_mode<synchronous>, transform_indices = @transform_5, window_bounds = array<i64: 128, 512>}, {pipeline_mode = #tpu.pipeline_mode<synchronous>, transform_indices = @transform_6, window_bounds = array<i64: 1, 512>}, {pipeline_mode = #tpu.pipeline_mode<synchronous>, transform_indices = @transform_7, window_bounds = array<i64: 512, 204>}, {pipeline_mode = #tpu.pipeline_mode<synchronous>, transform_indices = @transform_8, window_bounds = array<i64: 1, 204>}, {transform_indices = @transform_9, window_bounds = array<i64: 8, 204>}]} {
    %c0 = arith.constant 0 : index
    %c0_0 = arith.constant 0 : index
    %0 = vector.load %arg1[%c0, %c0_0] : memref<8x16xf32, #tpu.memory_space<vmem>>, vector<8x16xf32>
    %c0_1 = arith.constant 0 : index
    %c0_2 = arith.constant 0 : index
    %1 = vector.load %arg2[%c0_1, %c0_2] : memref<16x128xf32, #tpu.memory_space<vmem>>, vector<16x128xf32>
    %cst = arith.constant dense<0.000000e+00> : vector<8x128xf32>
    %2 = tpu.matmul %0, %1, %cst {dimension_numbers = #tpu.dot_dimension_numbers<[1], [0], [0], [1], [0, 0, 1, 1], [], []>} : vector<8x16xf32>, vector<16x128xf32>, vector<8x128xf32> -> vector<8x128xf32>
    %c0_3 = arith.constant 0 : index
    %c0_4 = arith.constant 0 : index
    %3 = vector.load %arg3[%c0_3, %c0_4] : memref<1x128xf32, #tpu.memory_space<vmem>>, vector<1x128xf32>
    %4 = vector.broadcast %3 : vector<1x128xf32> to vector<8x128xf32>
    %5 = arith.addf %2, %4 : vector<8x128xf32>
    %cst_5 = arith.constant 0.000000e+00 : f32
    %6 = vector.broadcast %cst_5 : f32 to vector<8x128xf32>
    %7 = arith.maximumf %5, %6 : vector<8x128xf32>
    %c0_6 = arith.constant 0 : index
    %c0_7 = arith.constant 0 : index
    %8 = vector.load %arg4[%c0_6, %c0_7] : memref<128x128xf32, #tpu.memory_space<vmem>>, vector<128x128xf32>
    %cst_8 = arith.constant dense<0.000000e+00> : vector<8x128xf32>
    %9 = tpu.matmul %7, %8, %cst_8 {dimension_numbers = #tpu.dot_dimension_numbers<[1], [0], [0], [1], [0, 0, 1, 1], [], []>} : vector<8x128xf32>, vector<128x128xf32>, vector<8x128xf32> -> vector<8x128xf32>
    %c0_9 = arith.constant 0 : index
    %c0_10 = arith.constant 0 : index
    %10 = vector.load %arg5[%c0_9, %c0_10] : memref<1x128xf32, #tpu.memory_space<vmem>>, vector<1x128xf32>
    %11 = vector.broadcast %10 : vector<1x128xf32> to vector<8x128xf32>
    %12 = arith.addf %9, %11 : vector<8x128xf32>
    %cst_11 = arith.constant 0.000000e+00 : f32
    %13 = vector.broadcast %cst_11 : f32 to vector<8x128xf32>
    %14 = arith.maximumf %12, %13 : vector<8x128xf32>
    %c0_12 = arith.constant 0 : index
    %c0_13 = arith.constant 0 : index
    %15 = vector.load %arg6[%c0_12, %c0_13] : memref<128x512xf32, #tpu.memory_space<vmem>>, vector<128x512xf32>
    %cst_14 = arith.constant dense<0.000000e+00> : vector<8x512xf32>
    %16 = tpu.matmul %14, %15, %cst_14 {dimension_numbers = #tpu.dot_dimension_numbers<[1], [0], [0], [1], [0, 0, 1, 1], [], []>} : vector<8x128xf32>, vector<128x512xf32>, vector<8x512xf32> -> vector<8x512xf32>
    %c0_15 = arith.constant 0 : index
    %c0_16 = arith.constant 0 : index
    %17 = vector.load %arg7[%c0_15, %c0_16] : memref<1x512xf32, #tpu.memory_space<vmem>>, vector<1x512xf32>
    %18 = vector.broadcast %17 : vector<1x512xf32> to vector<8x512xf32>
    %19 = arith.addf %16, %18 : vector<8x512xf32>
    %cst_17 = arith.constant 0.000000e+00 : f32
    %20 = vector.broadcast %cst_17 : f32 to vector<8x512xf32>
    %21 = arith.maximumf %19, %20 : vector<8x512xf32>
    %c0_18 = arith.constant 0 : index
    %c0_19 = arith.constant 0 : index
    %22 = vector.load %arg8[%c0_18, %c0_19] : memref<512x204xf32, #tpu.memory_space<vmem>>, vector<512x204xf32>
    %cst_20 = arith.constant dense<0.000000e+00> : vector<8x204xf32>
    %23 = tpu.matmul %21, %22, %cst_20 {dimension_numbers = #tpu.dot_dimension_numbers<[1], [0], [0], [1], [0, 0, 1, 1], [], []>} : vector<8x512xf32>, vector<512x204xf32>, vector<8x204xf32> -> vector<8x204xf32>
    %c0_21 = arith.constant 0 : index
    %c0_22 = arith.constant 0 : index
    %24 = vector.load %arg9[%c0_21, %c0_22] : memref<1x204xf32, #tpu.memory_space<vmem>>, vector<1x204xf32>
    %25 = vector.broadcast %24 : vector<1x204xf32> to vector<8x204xf32>
    %26 = arith.addf %23, %25 : vector<8x204xf32>
    %27 = vector.extract_strided_slice %26 {offsets = [0, 0], sizes = [8, 51], strides = [1, 1]} : vector<8x204xf32> to vector<8x51xf32>
    %cst_23 = arith.constant dense<0xFF800000> : vector<8xf32>
    %28 = vector.multi_reduction <maximumf>, %27, %cst_23 [1] : vector<8x51xf32> to vector<8xf32>
    %29 = vector.shape_cast %28 : vector<8xf32> to vector<8x1xf32>
    %30 = vector.broadcast %29 : vector<8x1xf32> to vector<8x51xf32>
    %31 = arith.subf %27, %30 : vector<8x51xf32>
    %32 = math.exp %31 : vector<8x51xf32>
    %cst_24 = arith.constant dense<0.000000e+00> : vector<8xf32>
    %33 = vector.multi_reduction <add>, %32, %cst_24 [1] : vector<8x51xf32> to vector<8xf32>
    %34 = vector.shape_cast %33 : vector<8xf32> to vector<8x1xf32>
    %35 = tpu.reciprocal %34 : vector<8x1xf32> -> vector<8x1xf32>
    %36 = vector.broadcast %35 : vector<8x1xf32> to vector<8x51xf32>
    %37 = arith.mulf %32, %36 : vector<8x51xf32>
    %38 = vector.extract_strided_slice %26 {offsets = [0, 51], sizes = [8, 51], strides = [1, 1]} : vector<8x204xf32> to vector<8x51xf32>
    %cst_25 = arith.constant dense<0xFF800000> : vector<8xf32>
    %39 = vector.multi_reduction <maximumf>, %38, %cst_25 [1] : vector<8x51xf32> to vector<8xf32>
    %40 = vector.shape_cast %39 : vector<8xf32> to vector<8x1xf32>
    %41 = vector.broadcast %40 : vector<8x1xf32> to vector<8x51xf32>
    %42 = arith.subf %38, %41 : vector<8x51xf32>
    %43 = math.exp %42 : vector<8x51xf32>
    %cst_26 = arith.constant dense<0.000000e+00> : vector<8xf32>
    %44 = vector.multi_reduction <add>, %43, %cst_26 [1] : vector<8x51xf32> to vector<8xf32>
    %45 = vector.shape_cast %44 : vector<8xf32> to vector<8x1xf32>
    %46 = tpu.reciprocal %45 : vector<8x1xf32> -> vector<8x1xf32>
    %47 = vector.broadcast %46 : vector<8x1xf32> to vector<8x51xf32>
    %48 = arith.mulf %43, %47 : vector<8x51xf32>
    %49 = vector.extract_strided_slice %26 {offsets = [0, 102], sizes = [8, 51], strides = [1, 1]} : vector<8x204xf32> to vector<8x51xf32>
    %cst_27 = arith.constant dense<0xFF800000> : vector<8xf32>
    %50 = vector.multi_reduction <maximumf>, %49, %cst_27 [1] : vector<8x51xf32> to vector<8xf32>
    %51 = vector.shape_cast %50 : vector<8xf32> to vector<8x1xf32>
    %52 = vector.broadcast %51 : vector<8x1xf32> to vector<8x51xf32>
    %53 = arith.subf %49, %52 : vector<8x51xf32>
    %54 = math.exp %53 : vector<8x51xf32>
    %cst_28 = arith.constant dense<0.000000e+00> : vector<8xf32>
    %55 = vector.multi_reduction <add>, %54, %cst_28 [1] : vector<8x51xf32> to vector<8xf32>
    %56 = vector.shape_cast %55 : vector<8xf32> to vector<8x1xf32>
    %57 = tpu.reciprocal %56 : vector<8x1xf32> -> vector<8x1xf32>
    %58 = vector.broadcast %57 : vector<8x1xf32> to vector<8x51xf32>
    %59 = arith.mulf %54, %58 : vector<8x51xf32>
    %60 = vector.extract_strided_slice %26 {offsets = [0, 153], sizes = [8, 51], strides = [1, 1]} : vector<8x204xf32> to vector<8x51xf32>
    %cst_29 = arith.constant dense<0xFF800000> : vector<8xf32>
    %61 = vector.multi_reduction <maximumf>, %60, %cst_29 [1] : vector<8x51xf32> to vector<8xf32>
    %62 = vector.shape_cast %61 : vector<8xf32> to vector<8x1xf32>
    %63 = vector.broadcast %62 : vector<8x1xf32> to vector<8x51xf32>
    %64 = arith.subf %60, %63 : vector<8x51xf32>
    %65 = math.exp %64 : vector<8x51xf32>
    %cst_30 = arith.constant dense<0.000000e+00> : vector<8xf32>
    %66 = vector.multi_reduction <add>, %65, %cst_30 [1] : vector<8x51xf32> to vector<8xf32>
    %67 = vector.shape_cast %66 : vector<8xf32> to vector<8x1xf32>
    %68 = tpu.reciprocal %67 : vector<8x1xf32> -> vector<8x1xf32>
    %69 = vector.broadcast %68 : vector<8x1xf32> to vector<8x51xf32>
    %70 = arith.mulf %65, %69 : vector<8x51xf32>
    %71 = tpu.concatenate %37, %48, %59, %70 in 1 : vector<8x51xf32>, vector<8x51xf32>, vector<8x51xf32>, vector<8x51xf32> -> vector<8x204xf32>
    %c0_31 = arith.constant 0 : index
    %c0_32 = arith.constant 0 : index
    %72 = vector.load %arg10[%c0_31, %c0_32] : memref<8x204xf32, #tpu.memory_space<vmem>>, vector<8x204xf32>
    tpu.vector_store %arg10[%c0_31, %c0_32], %71 {strides = array<i32>} : memref<8x204xf32, #tpu.memory_space<vmem>>, vector<8x204xf32>,
    return
  }
  func.func @transform_0(%arg0: i32) -> (i32, i32) {
    %c0_i32 = arith.constant 0 : i32
    %c0_i32_0 = arith.constant 0 : i32
    return %arg0, %c0_i32 : i32, i32
  }
  func.func @transform_1(%arg0: i32) -> (i32, i32) {
    %c0_i32 = arith.constant 0 : i32
    %c0_i32_0 = arith.constant 0 : i32
    %c0_i32_1 = arith.constant 0 : i32
    return %c0_i32, %c0_i32_0 : i32, i32
  }
  func.func @transform_2(%arg0: i32) -> (i32, i32) {
    %c0_i32 = arith.constant 0 : i32
    %c0_i32_0 = arith.constant 0 : i32
    %c0_i32_1 = arith.constant 0 : i32
    return %c0_i32, %c0_i32_0 : i32, i32
  }
  func.func @transform_3(%arg0: i32) -> (i32, i32) {
    %c0_i32 = arith.constant 0 : i32
    %c0_i32_0 = arith.constant 0 : i32
    %c0_i32_1 = arith.constant 0 : i32
    return %c0_i32, %c0_i32_0 : i32, i32
  }
  func.func @transform_4(%arg0: i32) -> (i32, i32) {
    %c0_i32 = arith.constant 0 : i32
    %c0_i32_0 = arith.constant 0 : i32
    %c0_i32_1 = arith.constant 0 : i32
    return %c0_i32, %c0_i32_0 : i32, i32
  }
  func.func @transform_5(%arg0: i32) -> (i32, i32) {
    %c0_i32 = arith.constant 0 : i32
    %c0_i32_0 = arith.constant 0 : i32
    %c0_i32_1 = arith.constant 0 : i32
    return %c0_i32, %c0_i32_0 : i32, i32
  }
  func.func @transform_6(%arg0: i32) -> (i32, i32) {
    %c0_i32 = arith.constant 0 : i32
    %c0_i32_0 = arith.constant 0 : i32
    %c0_i32_1 = arith.constant 0 : i32
    return %c0_i32, %c0_i32_0 : i32, i32
  }
  func.func @transform_7(%arg0: i32) -> (i32, i32) {
    %c0_i32 = arith.constant 0 : i32
    %c0_i32_0 = arith.constant 0 : i32
    %c0_i32_1 = arith.constant 0 : i32
    return %c0_i32, %c0_i32_0 : i32, i32
  }
  func.func @transform_8(%arg0: i32) -> (i32, i32) {
    %c0_i32 = arith.constant 0 : i32
    %c0_i32_0 = arith.constant 0 : i32
    %c0_i32_1 = arith.constant 0 : i32
    return %c0_i32, %c0_i32_0 : i32, i32
  }
  func.func @transform_9(%arg0: i32) -> (i32, i32) {
    %c0_i32 = arith.constant 0 : i32
    %c0_i32_0 = arith.constant 0 : i32
    return %arg0, %c0_i32 : i32, i32
  }
}

</mosaic_0001>

<bundles_post_ra>
// kernel: categorical_dqn_forward.1
= control target key start
LH: loop header
LB: loop body
LE: loop exit
PB: predicated region body
PF: predicated region fallthrough
CT: control target
= control target key end

     0   :  { %v1120_v0 = vmov 0.0|0.0   ;;  %vm1121_vm0 = vmmov 0   ;;  %v1122_v3 = vmov 0.0   ;;  %vm42_vm1 = vcmask 130048   ;;  %s1124_s21 = smov 26   ;;  %s1125_s22 = smov 103   ;;  %s1839_s1 = inlined_call_operand.vmem [shape: f32[16,128], index: 1, kind: input, shape index: {}]   ;;  %s1840_s3 = inlined_call_operand.vmem [shape: f32[128,128], index: 3, kind: input, shape index: {}]   ;;  %s1841_s0 = inlined_call_operand.vmem [shape: f32[8,16], index: 0, kind: input, shape index: {}]   ;;  %s1842_s5 = inlined_call_operand.vmem [shape: f32[128,512], index: 5, kind: input, shape index: {}]   ;;  %s1843_s2 = inlined_call_operand.vmem [shape: f32[1,128], index: 2, kind: input, shape index: {}]   ;;  %s1844_s7 = inlined_call_operand.vmem [shape: f32[512,204], index: 7, kind: input, shape index: {}]   ;;  %s1845_s4 = inlined_call_operand.vmem [shape: f32[1,128], index: 4, kind: input, shape index: {}]   ;;  %s1846_s6 = inlined_call_operand.vmem [shape: f32[1,512], index: 6, kind: input, shape index: {}]   ;;  %s1847_s8 = inlined_call_operand.vmem [shape: f32[1,204], index: 8, kind: input, shape index: {}]   ;;  %s1848_s9 = inlined_call_operand.vmem [shape: f32[8,204], index: 9, kind: output, shape index: {}]  }
   0x1   :  { %873 = vmatprep.subr.bf16.mxu0 %v1120_v0  ;;  %v33_v1 = vld [vmem:[%s1839_s1] sm:$0xff]  ;;  %v34_v2 = vld [vmem:[%s1839_s1 + $0x8] sm:$0xff]  ;;  %835 = vmatprep.mubr.msk.f32.mxu0 %vm1121_vm0, %v1122_v3  ;;  %v119_v7 = vld [vmem:[%s1840_s3 + $0x10] sm:$0xff]  ;;  %vm737_vm2 = vcmask 834968   ;;  %vm753_vm3 = vcmask 1048368   ;;  %vm781_vm4 = vcmask 621768  }
   0x2   :  { %v874_v4 = vpack.c.bf16 %v34_v2, %v33_v1  ;;  %876 = vmatprep.subr.bf16.mxu1 %v1120_v0  ;;  %v117_v5 = vld [vmem:[%s1840_s3] sm:$0xff]  ;;  %v118_v6 = vld [vmem:[%s1840_s3 + $0x8] sm:$0xff]  ;;  %870 = vmatprep.mubr.msk.f32.mxu1 %vm1121_vm0, %v1122_v3  ;;  %v120_v9 = vld [vmem:[%s1840_s3 + $0x18] sm:$0xff]  ;;  %vm755_vm5 = vcmask 203776   ;;  %vm725_vm6 = vcmask 416768   ;;  %vm772_vm7 = vcmask 211968  }
   0x3   :  { %v877_v8 = vpack.c.bf16 %v118_v6, %v117_v5  ;;  %v32_v10 = vld [vmem:[%s1841_s0] sm:$0xff]  ;;  %v880_v11 = vpack.c.bf16 %v120_v9, %v119_v7  ;;  %v122_v13 = vld [vmem:[%s1840_s3 + $0x28] sm:$0xff]  ;;  %v123_v15 = vld [vmem:[%s1840_s3 + $0x30] sm:$0xff]  ;;  %vm798_vm8 = vcmask 834560   ;;  %vm802_vm9 = vcmask 621568  }
   0x4   :  { %875 = vmatpush3.bf16.msra.mxu0 %v874_v4  ;;  %v121_v12 = vld [vmem:[%s1840_s3 + $0x20] sm:$0xff]  ;;  %v124_v16 = vld [vmem:[%s1840_s3 + $0x38] sm:$0xff]  ;;  %v126_v19 = vld [vmem:[%s1840_s3 + $0x48] sm:$0xff] }
   0x5   :  { %878 = vmatpush3.bf16.msra.mxu1 %v877_v8  ;;  %v883_v14 = vpack.c.bf16 %v122_v13, %v121_v12  ;;  %v886_v17 = vpack.c.bf16 %v124_v16, %v123_v15  ;;  %v125_v18 = vld [vmem:[%s1840_s3 + $0x40] sm:$0xff]  ;;  %v127_v21 = vld [vmem:[%s1840_s3 + $0x50] sm:$0xff]  ;;  %v128_v22 = vld [vmem:[%s1840_s3 + $0x58] sm:$0xff] }
   0x6   :  { %879 = vmatprep.subr.bf16.mxu1 %v1120_v0  ;;  %v889_v20 = vpack.c.bf16 %v126_v19, %v125_v18  ;;  %v892_v23 = vpack.c.bf16 %v128_v22, %v127_v21  ;;  %v129_v24 = vld [vmem:[%s1840_s3 + $0x60] sm:$0xff]  ;;  %v130_v25 = vld [vmem:[%s1840_s3 + $0x68] sm:$0xff]  ;;  %v131_v27 = vld [vmem:[%s1840_s3 + $0x70] sm:$0xff] }
   0x7   :  { %836 = vmatmul.mubr.msk.f32.vlgmr.msra.gmra.mrb[0].mxu0 %vm42_vm1, %v32_v10  ;;  %v895_v26 = vpack.c.bf16 %v130_v25, %v129_v24  ;;  %v132_v28 = vld [vmem:[%s1840_s3 + $0x78] sm:$0xff]  ;;  %v212_v30 = vld [vmem:[%s1842_s5 + $0x8] sm:$0xff]  ;;  %v211_v35 = vld [vmem:[%s1842_s5] sm:$0xff] }
   0x8   :  { %361 = vmatprep.mubr.f32.mxu0 %v1122_v3  ;;  %v898_v29 = vpack.c.bf16 %v132_v28, %v131_v27  ;;  %v216_v31 = vld [vmem:[%s1842_s5 + $0x28] sm:$0xff]  ;;  %v214_v32 = vld [vmem:[%s1842_s5 + $0x18] sm:$0xff]  ;;  %v215_v36 = vld [vmem:[%s1842_s5 + $0x20] sm:$0xff] }
   0x9   :  { %881 = vmatpush3.bf16.msra.mxu1 %v880_v11  ;;  %v900_v33 = vpack.c.bf16 %v216_v31, %v212_v30  ;;  %v218_v34 = vld [vmem:[%s1842_s5 + $0x38] sm:$0xff]  ;;  %v902_v38 = vpack.c.bf16 %v215_v36, %v211_v35  ;;  %v220_v39 = vld [vmem:[%s1842_s5 + $0x48] sm:$0xff]  ;;  %v219_v42 = vld [vmem:[%s1842_s5 + $0x40] sm:$0xff] }
   0xa   :  { %882 = vmatprep.subr.bf16.mxu1 %v1120_v0  ;;  %v932_v37 = vpack.c.bf16 %v218_v34, %v214_v32  ;;  %v224_v40 = vld [vmem:[%s1842_s5 + $0x68] sm:$0xff]  ;;  %v223_v43 = vld [vmem:[%s1842_s5 + $0x60] sm:$0xff]  ;;  %v213_v13 = vld [vmem:[%s1842_s5 + $0x10] sm:$0xff] }
   0xb   :  { %901 = vmatprep.subr.bf16.mxu0 %v900_v33  ;;  %v904_v41 = vpack.c.bf16 %v224_v40, %v220_v39  ;;  %v906_v44 = vpack.c.bf16 %v223_v43, %v219_v42  ;;  %v228_v45 = vld [vmem:[%s1842_s5 + $0x88] sm:$0xff]  ;;  %v227_v48 = vld [vmem:[%s1842_s5 + $0x80] sm:$0xff]  ;;  %v222_v16 = vld [vmem:[%s1842_s5 + $0x58] sm:$0xff] }
   0xc   :  { %903 = vmatpush1.bf16.msra.mxu0 %v902_v38  ;;  %v232_v46 = vld [vmem:[%s1842_s5 + $0xa8] sm:$0xff]  ;;  %v231_v49 = vld [vmem:[%s1842_s5 + $0xa0] sm:$0xff]  ;;  %v225_v24 = vld [vmem:[%s1842_s5 + $0x70] sm:$0xff] }
   0xd   :  { %884 = vmatpush3.bf16.msra.mxu1 %v883_v14  ;;  %905 = vmatprep.subr.bf16.mxu0 %v904_v41  ;;  %v908_v47 = vpack.c.bf16 %v232_v46, %v228_v45  ;;  %v910_v50 = vpack.c.bf16 %v231_v49, %v227_v48  ;;  %v236_v51 = vld [vmem:[%s1842_s5 + $0xc8] sm:$0xff]  ;;  %v235_v54 = vld [vmem:[%s1842_s5 + $0xc0] sm:$0xff]  ;;  %v217_v14 = vld [vmem:[%s1842_s5 + $0x30] sm:$0xff] }
   0xe   :  { %885 = vmatprep.subr.bf16.mxu1 %v1120_v0  ;;  %v240_v52 = vld [vmem:[%s1842_s5 + $0xe8] sm:$0xff]  ;;  %v239_v55 = vld [vmem:[%s1842_s5 + $0xe0] sm:$0xff]  ;;  %v230_v25 = vld [vmem:[%s1842_s5 + $0x98] sm:$0xff] }
   0xf   :  { %v912_v53 = vpack.c.bf16 %v240_v52, %v236_v51  ;;  %v914_v56 = vpack.c.bf16 %v239_v55, %v235_v54  ;;  %v244_v57 = vld [vmem:[%s1842_s5 + $0x108] sm:$0xff]  ;;  %v243_v60 = vld [vmem:[%s1842_s5 + $0x100] sm:$0xff]  ;;  %v233_v30 = vld [vmem:[%s1842_s5 + $0xb0] sm:$0xff] }
  0x10   :  { %907 = vmatpush1.bf16.msra.mxu0 %v906_v44  ;;  %v248_v58 = vld [vmem:[%s1842_s5 + $0x128] sm:$0xff]  ;;  %v247_v61 = vld [vmem:[%s1842_s5 + $0x120] sm:$0xff]  ;;  %v238_v31 = vld [vmem:[%s1842_s5 + $0xd8] sm:$0xff] }
  0x11   :  { %887 = vmatpush3.bf16.msra.mxu1 %v886_v17  ;;  %909 = vmatprep.subr.bf16.mxu0 %v908_v47  ;;  %v916_v59 = vpack.c.bf16 %v248_v58, %v244_v57  ;;  %v918_v62 = vpack.c.bf16 %v247_v61, %v243_v60  ;;  %v252_v63 = vld [vmem:[%s1842_s5 + $0x148] sm:$0xff]  ;;  %v251_v2 = vld [vmem:[%s1842_s5 + $0x140] sm:$0xff]  ;;  %v226_v17 = vld [vmem:[%s1842_s5 + $0x78] sm:$0xff] }
  0x12   :  { %888 = vmatprep.subr.bf16.mxu1 %v1120_v0  ;;  %v255_v4 = vld [vmem:[%s1842_s5 + $0x160] sm:$0xff]  ;;  %v260_v6 = vld [vmem:[%s1842_s5 + $0x188] sm:$0xff]  ;;  %v936_v22 = vpack.c.bf16 %v226_v17, %v222_v16  ;;  %v242_v32 = vld [vmem:[%s1842_s5 + $0xf8] sm:$0xff] }
  0x13   :  { %v922_v5 = vpack.c.bf16 %v255_v4, %v251_v2  ;;  %v264_v7 = vld [vmem:[%s1842_s5 + $0x1a8] sm:$0xff]  ;;  %v259_v9 = vld [vmem:[%s1842_s5 + $0x180] sm:$0xff]  ;;  %v944_v33 = vpack.c.bf16 %v242_v32, %v238_v31  ;;  %v237_v34 = vld [vmem:[%s1842_s5 + $0xd0] sm:$0xff] }
  0x14   :  { %911 = vmatpush1.bf16.msra.mxu0 %v910_v50  ;;  %v924_v8 = vpack.c.bf16 %v264_v7, %v260_v6  ;;  %v263_v10 = vld [vmem:[%s1842_s5 + $0x1a0] sm:$0xff]  ;;  %v241_v35 = vld [vmem:[%s1842_s5 + $0xf0] sm:$0xff]  ;;  %v246_v36 = vld [vmem:[%s1842_s5 + $0x118] sm:$0xff] }
  0x15   :  { %890 = vmatpush3.bf16.msra.mxu1 %v889_v20  ;;  %913 = vmatprep.subr.bf16.mxu0 %v912_v53  ;;  %v926_v11 = vpack.c.bf16 %v263_v10, %v259_v9  ;;  %v808_v12 = vld [vmem:[%s1843_s2] ss:$0 sm:$0xff]  ;;  %v934_v20 = vpack.c.bf16 %v217_v14, %v213_v13  ;;  %v946_v38 = vpack.c.bf16 %v241_v35, %v237_v34  ;;  %v245_v40 = vld [vmem:[%s1842_s5 + $0x110] sm:$0xff]  ;;  %v254_v42 = vld [vmem:[%s1842_s5 + $0x158] sm:$0xff] }
  0x16   :  { %891 = vmatprep.subr.bf16.mxu1 %v1120_v0  ;;  %v249_v41 = vld [vmem:[%s1842_s5 + $0x130] sm:$0xff]  ;;  %v258_v43 = vld [vmem:[%s1842_s5 + $0x178] sm:$0xff]  ;;  %v268_v55 = vld [vmem:[%s1842_s5 + $0x1c8] sm:$0xff] }
  0x17   :  { %v950_v44 = vpack.c.bf16 %v249_v41, %v245_v40  ;;  %v952_v45 = vpack.c.bf16 %v258_v43, %v254_v42  ;;  %v253_v46 = vld [vmem:[%s1842_s5 + $0x150] sm:$0xff]  ;;  %v262_v48 = vld [vmem:[%s1842_s5 + $0x198] sm:$0xff]  ;;  %v267_v60 = vld [vmem:[%s1842_s5 + $0x1c0] sm:$0xff] }
  0x18   :  { %915 = vmatpush1.bf16.msra.mxu0 %v914_v56  ;;  %v257_v47 = vld [vmem:[%s1842_s5 + $0x170] sm:$0xff]  ;;  %v266_v49 = vld [vmem:[%s1842_s5 + $0x1b8] sm:$0xff]  ;;  %v272_v56 = vld [vmem:[%s1842_s5 + $0x1e8] sm:$0xff] }
  0x19   :  { %893 = vmatpush3.bf16.msra.mxu1 %v892_v23  ;;  %917 = vmatprep.subr.bf16.mxu0 %v916_v59  ;;  %v221_v23 = vld [vmem:[%s1842_s5 + $0x50] sm:$0xff]  ;;  %v954_v50 = vpack.c.bf16 %v257_v47, %v253_v46  ;;  %v956_v51 = vpack.c.bf16 %v266_v49, %v262_v48  ;;  %v270_v57 = vld [vmem:[%s1842_s5 + $0x1d8] sm:$0xff]  ;;  %v928_v58 = vpack.c.bf16 %v272_v56, %v268_v55  ;;  %v271_v61 = vld [vmem:[%s1842_s5 + $0x1e0] sm:$0xff] }
  0x1a   :  { %894 = vmatprep.subr.bf16.mxu1 %v1120_v0  ;;  %v938_v27 = vpack.c.bf16 %v225_v24, %v221_v23  ;;  %v261_v52 = vld [vmem:[%s1842_s5 + $0x190] sm:$0xff]  ;;  %v274_v59 = vld [vmem:[%s1842_s5 + $0x1f8] sm:$0xff]  ;;  %v444_v4 = vld [vmem:[%s1844_s7 + $0x8] sm:$0xff] }
  0x1b   :  { %v265_v53 = vld [vmem:[%s1842_s5 + $0x1b0] sm:$0xff]  ;;  %v508_v6 = vld [vmem:[%s1844_s7 + $0x208] sm:$0xff]  ;;  %v810_v10 = vld [vmem:[%s1845_s4] ss:$0 sm:$0xff] }
  0x1c   :  { %919 = vmatpush1.bf16.msra.mxu0 %v918_v62  ;;  %v958_v54 = vpack.c.bf16 %v265_v53, %v261_v52  ;;  %v960_v62 = vpack.c.bf16 %v274_v59, %v270_v57  ;;  %v507_v13 = vld [vmem:[%s1844_s7 + $0x200] sm:$0xff]  ;;  %v509_v14 = vld [vmem:[%s1844_s7 + $0x210] sm:$0xff]  ;;  %v450_v17 = vld [vmem:[%s1844_s7 + $0x38] sm:$0xff] }
  0x1d   :  { %896 = vmatpush3.bf16.msra.mxu1 %v895_v26  ;;  %v234_v26 = vld [vmem:[%s1842_s5 + $0xb8] sm:$0xff]  ;;  %v1030_v23 = vpack.c.bf16 %v509_v14, %v507_v13  ;;  %v447_v24 = vld [vmem:[%s1844_s7 + $0x20] sm:$0xff]  ;;  %v452_v31 = vld [vmem:[%s1844_s7 + $0x48] sm:$0xff] }
  0x1e   :  { %897 = vmatprep.subr.bf16.mxu1 %v1120_v0  ;;  %v256_v0 = vld [vmem:[%s1842_s5 + $0x168] sm:$0xff]  ;;  %v940_v28 = vpack.c.bf16 %v234_v26, %v230_v25  ;;  %v449_v25 = vld [vmem:[%s1844_s7 + $0x30] sm:$0xff]  ;;  %v454_v32 = vld [vmem:[%s1844_s7 + $0x58] sm:$0xff] }
  0x1f   :  { %v920_v1 = vpack.c.bf16 %v256_v0, %v252_v63  ;;  %v930_v63 = vpack.c.bf16 %v271_v61, %v267_v60  ;;  %v269_v0 = vld [vmem:[%s1842_s5 + $0x1d0] sm:$0xff]  ;;  %v970_v34 = vpack.c.bf16 %v449_v25, %v447_v24  ;;  %v515_v40 = vld [vmem:[%s1844_s7 + $0x240] sm:$0xff]  ;;  %v456_v42 = vld [vmem:[%s1844_s7 + $0x68] sm:$0xff] }
  0x20   :  { %v517_v41 = vld [vmem:[%s1844_s7 + $0x250] sm:$0xff]  ;;  %v458_v43 = vld [vmem:[%s1844_s7 + $0x78] sm:$0xff]  ;;  %v455_v48 = vld [vmem:[%s1844_s7 + $0x60] sm:$0xff] }
  0x21   :  { %899 = vmatpush3.bf16.msra.mxu1 %v898_v29  ;;  %921 = vmatprep.subr.bf16.mxu0 %v920_v1  ;;  %v229_v29 = vld [vmem:[%s1842_s5 + $0x90] sm:$0xff]  ;;  %v1038_v47 = vpack.c.bf16 %v517_v41, %v515_v40  ;;  %v519_v52 = vld [vmem:[%s1844_s7 + $0x260] sm:$0xff]  ;;  %v462_v55 = vld [vmem:[%s1844_s7 + $0x98] sm:$0xff] }
  0x22   :  { %933 = vmatprep.subr.bf16.mxu1 %v932_v37  ;;  %923 = vmatpush1.bf16.msra.mxu0 %v922_v5  ;;  %v250_v37 = vld [vmem:[%s1842_s5 + $0x138] sm:$0xff]  ;;  %v273_v1 = vld [vmem:[%s1842_s5 + $0x1f0] sm:$0xff]  ;;  %v524_v56 = vld [vmem:[%s1844_s7 + $0x288] sm:$0xff] }
  0x23   :  { %925 = vmatprep.subr.bf16.mxu0 %v924_v8  ;;  %v948_v39 = vpack.c.bf16 %v250_v37, %v246_v36  ;;  %v962_v2 = vpack.c.bf16 %v273_v1, %v269_v0  ;;  %v446_v5 = vld [vmem:[%s1844_s7 + $0x18] sm:$0xff]  ;;  %v451_v36 = vld [vmem:[%s1844_s7 + $0x40] sm:$0xff]  ;;  %v453_v37 = vld [vmem:[%s1844_s7 + $0x50] sm:$0xff] }
  0x24   :  { %v964_v7 = vpack.c.bf16 %v446_v5, %v444_v4  ;;  %v510_v8 = vld [vmem:[%s1844_s7 + $0x218] sm:$0xff]  ;;  %v974_v46 = vpack.c.bf16 %v453_v37, %v451_v36  ;;  %v457_v49 = vld [vmem:[%s1844_s7 + $0x70] sm:$0xff]  ;;  %v459_v60 = vld [vmem:[%s1844_s7 + $0x80] sm:$0xff] }
  0x25   :  { %v1028_v9 = vpack.c.bf16 %v510_v8, %v508_v6  ;;  %v521_v53 = vld [vmem:[%s1844_s7 + $0x270] sm:$0xff]  ;;  %v526_v57 = vld [vmem:[%s1844_s7 + $0x298] sm:$0xff]  ;;  %v523_v0 = vld [vmem:[%s1844_s7 + $0x280] sm:$0xff] }
  0x26   :  { %927 = vmatpush1.bf16.msra.mxu0 %v926_v11  ;;  %v443_v11 = vld [vmem:[%s1844_s7] sm:$0xff]  ;;  %v1042_v59 = vpack.c.bf16 %v521_v53, %v519_v52  ;;  %v461_v61 = vld [vmem:[%s1844_s7 + $0x90] sm:$0xff]  ;;  %v466_v4 = vld [vmem:[%s1844_s7 + $0xb8] sm:$0xff] }
  0x27   :  { %929 = vmatprep.subr.bf16.mxu0 %v928_v58  ;;  %v978_v58 = vpack.c.bf16 %v457_v49, %v455_v48  ;;  %v525_v1 = vld [vmem:[%s1844_s7 + $0x290] sm:$0xff]  ;;  %v528_v5 = vld [vmem:[%s1844_s7 + $0x2a8] sm:$0xff]  ;;  %v530_v6 = vld [vmem:[%s1844_s7 + $0x2b8] sm:$0xff] }
  0x28   :  { %v1046_v8 = vpack.c.bf16 %v525_v1, %v523_v0  ;;  %v527_v13 = vld [vmem:[%s1844_s7 + $0x2a0] sm:$0xff]  ;;  %v529_v14 = vld [vmem:[%s1844_s7 + $0x2b0] sm:$0xff]  ;;  %v540_v40 = vld [vmem:[%s1844_s7 + $0x308] sm:$0xff] }
  0x29   :  { %v531_v25 = vld [vmem:[%s1844_s7 + $0x2c0] sm:$0xff]  ;;  %v537_v37 = vld [vmem:[%s1844_s7 + $0x2f0] sm:$0xff]  ;;  %v542_v41 = vld [vmem:[%s1844_s7 + $0x318] sm:$0xff] }
  0x2a   :  { %931 = vmatpush1.bf16.msra.mxu0 %v930_v63  ;;  %v1044_v63 = vpack.c.bf16 %v526_v57, %v524_v56  ;;  %v535_v36 = vld [vmem:[%s1844_s7 + $0x2e0] sm:$0xff]  ;;  %v541_v49 = vld [vmem:[%s1844_s7 + $0x310] sm:$0xff]  ;;  %v544_v52 = vld [vmem:[%s1844_s7 + $0x328] sm:$0xff] }
  0x2b   :  { %1029 = vmatprep.subr.bf16.mxu0 %v1028_v9  ;;  %v463_v9 = vld [vmem:[%s1844_s7 + $0xa0] sm:$0xff]  ;;  %v546_v53 = vld [vmem:[%s1844_s7 + $0x338] sm:$0xff]  ;;  %v481_v57 = vld [vmem:[%s1844_s7 + $0x130] sm:$0xff] }
  0x2c   :  { %v539_v48 = vld [vmem:[%s1844_s7 + $0x300] sm:$0xff]  ;;  %v548_v0 = vld [vmem:[%s1844_s7 + $0x348] sm:$0xff]  ;;  %v550_v1 = vld [vmem:[%s1844_s7 + $0x358] sm:$0xff] }
  0x2d   :  { %v479_v56 = vld [vmem:[%s1844_s7 + $0x120] sm:$0xff] }
  0xda   :  { %v112_v15 = vpop.f32.mrb[0].mxu0 }
  0xdb   :  { %v113_v18 = vadd.f32 %v808_v12, %v112_v15  ;;  %v837_v19 = vpop.f32.mrb[1].mxu0  ;;  %v445_v12 = vld [vmem:[%s1844_s7 + $0x10] sm:$0xff]  ;;  %v448_v15 = vld [vmem:[%s1844_s7 + $0x28] sm:$0xff] }
  0xdc   :  { %v514_v19 = vld [vmem:[%s1844_s7 + $0x238] sm:$0xff] }
  0xdd   :  { %v116_v21 = vmax.f32 %v113_v18, 0.0  ;;  %v512_v18 = vld [vmem:[%s1844_s7 + $0x228] sm:$0xff] }
  0xdf   :  { %871 = vmatmul.mubr.f32.vlgmr.msra.gmra.mrb[0].mxu1 %v116_v21 }
  0xe0   :  { %935 = vmatpush1.bf16.msra.mxu1 %v934_v20  ;;  %432 = vmatprep.mubr.f32.mxu1 %v1122_v3  ;;  %v942_v3 = vpack.c.bf16 %v233_v30, %v229_v29  ;;  %v511_v29 = vld [vmem:[%s1844_s7 + $0x220] sm:$0xff]  ;;  %v513_v30 = vld [vmem:[%s1844_s7 + $0x230] sm:$0xff] }
  0xe1   :  { %937 = vmatprep.subr.bf16.mxu1 %v936_v22  ;;  %v966_v22 = vpack.c.bf16 %v445_v12, %v443_v11  ;;  %v1034_v35 = vpack.c.bf16 %v513_v30, %v511_v29  ;;  %v1048_v12 = vpack.c.bf16 %v530_v6, %v528_v5  ;;  %v536_v29 = vld [vmem:[%s1844_s7 + $0x2e8] sm:$0xff]  ;;  %v538_v30 = vld [vmem:[%s1844_s7 + $0x2f8] sm:$0xff]  ;;  %v483_v5 = vld [vmem:[%s1844_s7 + $0x140] sm:$0xff] }
  0xe2   :  { %v485_v6 = vld [vmem:[%s1844_s7 + $0x150] sm:$0xff] }
  0xe4   :  { %939 = vmatpush1.bf16.msra.mxu1 %v938_v27  ;;  %v968_v27 = vpack.c.bf16 %v450_v17, %v448_v15  ;;  %v468_v15 = vld [vmem:[%s1844_s7 + $0xc8] sm:$0xff] }
  0xe5   :  { %941 = vmatprep.subr.bf16.mxu1 %v940_v28  ;;  %v1032_v28 = vpack.c.bf16 %v514_v19, %v512_v18  ;;  %v532_v17 = vld [vmem:[%s1844_s7 + $0x2c8] sm:$0xff]  ;;  %v534_v18 = vld [vmem:[%s1844_s7 + $0x2d8] sm:$0xff] }
  0xe6   :  { %v1052_v24 = vpack.c.bf16 %v534_v18, %v532_v17  ;;  %v487_v17 = vld [vmem:[%s1844_s7 + $0x160] sm:$0xff]  ;;  %v489_v18 = vld [vmem:[%s1844_s7 + $0x170] sm:$0xff] }
  0xe8   :  { %943 = vmatpush1.bf16.msra.mxu1 %v942_v3  ;;  %v516_v3 = vld [vmem:[%s1844_s7 + $0x248] sm:$0xff] }
  0xe9   :  { %945 = vmatprep.subr.bf16.mxu1 %v944_v33  ;;  %v518_v33 = vld [vmem:[%s1844_s7 + $0x258] sm:$0xff] }
  0xec   :  { %947 = vmatpush1.bf16.msra.mxu1 %v946_v38  ;;  %v972_v38 = vpack.c.bf16 %v454_v32, %v452_v31 }
  0xed   :  { %949 = vmatprep.subr.bf16.mxu1 %v948_v39  ;;  %v1036_v39 = vpack.c.bf16 %v518_v33, %v516_v3  ;;  %v471_v3 = vld [vmem:[%s1844_s7 + $0xe0] sm:$0xff]  ;;  %v473_v33 = vld [vmem:[%s1844_s7 + $0xf0] sm:$0xff] }
  0xf0   :  { %951 = vmatpush1.bf16.msra.mxu1 %v950_v44  ;;  %v520_v44 = vld [vmem:[%s1844_s7 + $0x268] sm:$0xff] }
  0xf1   :  { %953 = vmatprep.subr.bf16.mxu1 %v952_v45  ;;  %v522_v45 = vld [vmem:[%s1844_s7 + $0x278] sm:$0xff] }
  0xf4   :  { %955 = vmatpush1.bf16.msra.mxu1 %v954_v50  ;;  %v976_v50 = vpack.c.bf16 %v458_v43, %v456_v42  ;;  %v994_v42 = vpack.c.bf16 %v473_v33, %v471_v3  ;;  %v1058_v43 = vpack.c.bf16 %v537_v37, %v535_v36  ;;  %v555_v3 = vld [vmem:[%s1844_s7 + $0x380] sm:$0xff]  ;;  %v557_v33 = vld [vmem:[%s1844_s7 + $0x390] sm:$0xff]  ;;  %v560_v36 = vld [vmem:[%s1844_s7 + $0x3a8] sm:$0xff] }
  0xf5   :  { %957 = vmatprep.subr.bf16.mxu1 %v956_v51  ;;  %v1040_v51 = vpack.c.bf16 %v522_v45, %v520_v44  ;;  %v475_v44 = vld [vmem:[%s1844_s7 + $0x100] sm:$0xff]  ;;  %v477_v45 = vld [vmem:[%s1844_s7 + $0x110] sm:$0xff]  ;;  %v562_v37 = vld [vmem:[%s1844_s7 + $0x3b8] sm:$0xff] }
  0xf8   :  { %959 = vmatpush1.bf16.msra.mxu1 %v958_v54  ;;  %v460_v54 = vld [vmem:[%s1844_s7 + $0x88] sm:$0xff] }
  0xf9   :  { %961 = vmatprep.subr.bf16.mxu1 %v960_v62  ;;  %v980_v62 = vpack.c.bf16 %v462_v55, %v460_v54  ;;  %v998_v54 = vpack.c.bf16 %v477_v45, %v475_v44  ;;  %v1062_v55 = vpack.c.bf16 %v541_v49, %v539_v48  ;;  %v559_v44 = vld [vmem:[%s1844_s7 + $0x3a0] sm:$0xff]  ;;  %v561_v45 = vld [vmem:[%s1844_s7 + $0x3b0] sm:$0xff]  ;;  %v564_v48 = vld [vmem:[%s1844_s7 + $0x3c8] sm:$0xff] }
  0xfa   :  { %v566_v49 = vld [vmem:[%s1844_s7 + $0x3d8] sm:$0xff] }
  0xfc   :  { %963 = vmatpush1.bf16.msra.mxu1 %v962_v2  ;;  %v464_v2 = vld [vmem:[%s1844_s7 + $0xa8] sm:$0xff] }
  0xfd   :  { %965 = vmatprep.subr.bf16.mxu1 %v964_v7  ;;  %v982_v7 = vpack.c.bf16 %v461_v61, %v459_v60  ;;  %v984_v11 = vpack.c.bf16 %v466_v4, %v464_v2  ;;  %v543_v60 = vld [vmem:[%s1844_s7 + $0x320] sm:$0xff]  ;;  %v545_v61 = vld [vmem:[%s1844_s7 + $0x330] sm:$0xff]  ;;  %v1002_v2 = vpack.c.bf16 %v481_v57, %v479_v56 }
  0xfe   :  { %v1066_v4 = vpack.c.bf16 %v545_v61, %v543_v60  ;;  %v563_v56 = vld [vmem:[%s1844_s7 + $0x3c0] sm:$0xff]  ;;  %v504_v60 = vld [vmem:[%s1844_s7 + $0x1e8] sm:$0xff]  ;;  %v506_v61 = vld [vmem:[%s1844_s7 + $0x1f8] sm:$0xff] }
 0x1b2   :  { %v206_v16 = vpop.f32.mrb[0].mxu1 }
 0x1b3   :  { %v207_v20 = vadd.f32 %v810_v10, %v206_v16  ;;  %v872_v21 = vpop.f32.mrb[1].mxu1  ;;  %v465_v10 = vld [vmem:[%s1844_s7 + $0xb0] sm:$0xff]  ;;  %v470_v16 = vld [vmem:[%s1844_s7 + $0xd8] sm:$0xff] }
 0x1b4   :  { %v986_v19 = vpack.c.bf16 %v465_v10, %v463_v9  ;;  %v467_v21 = vld [vmem:[%s1844_s7 + $0xc0] sm:$0xff]  ;;  %v549_v10 = vld [vmem:[%s1844_s7 + $0x350] sm:$0xff] }
 0x1b5   :  { %v210_v26 = vmax.f32 %v207_v20, 0.0  ;;  %v1050_v20 = vpack.c.bf16 %v529_v14, %v527_v13  ;;  %v547_v9 = vld [vmem:[%s1844_s7 + $0x340] sm:$0xff]  ;;  %v552_v13 = vld [vmem:[%s1844_s7 + $0x368] sm:$0xff]  ;;  %v554_v14 = vld [vmem:[%s1844_s7 + $0x378] sm:$0xff] }
 0x1b7   :  { %362 = vmatmul.mubr.f32.vlgmr.msra.gmra.mrb[2].mxu0 %v210_v26  ;;  %433 = vmatmul.mubr.f32.vlgmr.msra.gmra.mrb[2].mxu1 %v210_v26  ;;  %v533_v26 = vld [vmem:[%s1844_s7 + $0x2d0] sm:$0xff] }
 0x1b8   :  { %967 = vmatpush1.bf16.msra.mxu1 %v966_v22  ;;  %1031 = vmatpush1.bf16.msra.mxu0 %v1030_v23  ;;  %v469_v22 = vld [vmem:[%s1844_s7 + $0xd0] sm:$0xff]  ;;  %v988_v23 = vpack.c.bf16 %v470_v16, %v468_v15  ;;  %v1054_v32 = vpack.c.bf16 %v533_v26, %v531_v25  ;;  %v1006_v15 = vpack.c.bf16 %v485_v6, %v483_v5  ;;  %v556_v25 = vld [vmem:[%s1844_s7 + $0x388] sm:$0xff]  ;;  %v558_v26 = vld [vmem:[%s1844_s7 + $0x398] sm:$0xff] }
 0x1b9   :  { %969 = vmatprep.subr.bf16.mxu1 %v968_v27  ;;  %1033 = vmatprep.subr.bf16.mxu0 %v1032_v28  ;;  %v472_v27 = vld [vmem:[%s1844_s7 + $0xe8] sm:$0xff]  ;;  %v474_v28 = vld [vmem:[%s1844_s7 + $0xf8] sm:$0xff]  ;;  %v990_v31 = vpack.c.bf16 %v469_v22, %v467_v21  ;;  %v1070_v16 = vpack.c.bf16 %v549_v10, %v547_v9  ;;  %v551_v21 = vld [vmem:[%s1844_s7 + $0x360] sm:$0xff]  ;;  %v277_v9 = vlaneseq }
 0x1ba   :  { %v553_v22 = vld [vmem:[%s1844_s7 + $0x370] sm:$0xff]  ;;  %v567_v6 = vld [vmem:[%s1844_s7 + $0x3e0] sm:$0xff] }
 0x1bb   :  { %v278_v10 = vshrl.u32 %v277_v9, 7 }
 0x1bc   :  { %971 = vmatpush1.bf16.msra.mxu1 %v970_v34  ;;  %1035 = vmatpush1.bf16.msra.mxu0 %v1034_v35  ;;  %v992_v34 = vpack.c.bf16 %v474_v28, %v472_v27  ;;  %v1056_v35 = vpack.c.bf16 %v538_v30, %v536_v29  ;;  %v1010_v27 = vpack.c.bf16 %v489_v18, %v487_v17  ;;  %v491_v29 = vld [vmem:[%s1844_s7 + $0x180] sm:$0xff]  ;;  %v493_v30 = vld [vmem:[%s1844_s7 + $0x190] sm:$0xff] }
 0x1bd   :  { %973 = vmatprep.subr.bf16.mxu1 %v972_v38  ;;  %1037 = vmatprep.subr.bf16.mxu0 %v1036_v39  ;;  %v476_v38 = vld [vmem:[%s1844_s7 + $0x108] sm:$0xff]  ;;  %v478_v39 = vld [vmem:[%s1844_s7 + $0x118] sm:$0xff]  ;;  %v1074_v28 = vpack.c.bf16 %v553_v22, %v551_v21 }
 0x1c0   :  { %975 = vmatpush1.bf16.msra.mxu1 %v974_v46  ;;  %1039 = vmatpush1.bf16.msra.mxu0 %v1038_v47  ;;  %v996_v46 = vpack.c.bf16 %v478_v39, %v476_v38  ;;  %v1060_v47 = vpack.c.bf16 %v542_v41, %v540_v40  ;;  %v1014_v38 = vpack.c.bf16 %v493_v30, %v491_v29  ;;  %v495_v40 = vld [vmem:[%s1844_s7 + $0x1a0] sm:$0xff]  ;;  %v497_v41 = vld [vmem:[%s1844_s7 + $0x1b0] sm:$0xff] }
 0x1c1   :  { %977 = vmatprep.subr.bf16.mxu1 %v976_v50  ;;  %1041 = vmatprep.subr.bf16.mxu0 %v1040_v51  ;;  %v480_v50 = vld [vmem:[%s1844_s7 + $0x128] sm:$0xff]  ;;  %v482_v51 = vld [vmem:[%s1844_s7 + $0x138] sm:$0xff]  ;;  %v1078_v39 = vpack.c.bf16 %v557_v33, %v555_v3 }
 0x1c4   :  { %979 = vmatpush1.bf16.msra.mxu1 %v978_v58  ;;  %1043 = vmatpush1.bf16.msra.mxu0 %v1042_v59  ;;  %v1000_v58 = vpack.c.bf16 %v482_v51, %v480_v50  ;;  %v1064_v59 = vpack.c.bf16 %v546_v53, %v544_v52  ;;  %v1018_v50 = vpack.c.bf16 %v497_v41, %v495_v40 }
 0x1c5   :  { %981 = vmatprep.subr.bf16.mxu1 %v980_v62  ;;  %1045 = vmatprep.subr.bf16.mxu0 %v1044_v63  ;;  %v484_v62 = vld [vmem:[%s1844_s7 + $0x148] sm:$0xff]  ;;  %v486_v63 = vld [vmem:[%s1844_s7 + $0x158] sm:$0xff]  ;;  %v1082_v51 = vpack.c.bf16 %v561_v45, %v559_v44  ;;  %v1084_v53 = vpack.c.bf16 %v566_v49, %v564_v48 }
 0x1c8   :  { %983 = vmatpush1.bf16.msra.mxu1 %v982_v7  ;;  %1047 = vmatpush1.bf16.msra.mxu0 %v1046_v8  ;;  %v1004_v7 = vpack.c.bf16 %v486_v63, %v484_v62  ;;  %v1068_v8 = vpack.c.bf16 %v550_v1, %v548_v0  ;;  %v568_v62 = vld [vmem:[%s1844_s7 + $0x3e8] sm:$0xff]  ;;  %v1024_v63 = vpack.c.bf16 %v506_v61, %v504_v60  ;;  %v570_v0 = vld [vmem:[%s1844_s7 + $0x3f8] sm:$0xff]  ;;  %v503_v1 = vld [vmem:[%s1844_s7 + $0x1e0] sm:$0xff] }
 0x1c9   :  { %985 = vmatprep.subr.bf16.mxu1 %v984_v11  ;;  %1049 = vmatprep.subr.bf16.mxu0 %v1048_v12  ;;  %v488_v11 = vld [vmem:[%s1844_s7 + $0x168] sm:$0xff]  ;;  %v490_v12 = vld [vmem:[%s1844_s7 + $0x178] sm:$0xff] }
 0x1cc   :  { %987 = vmatpush1.bf16.msra.mxu1 %v986_v19  ;;  %1051 = vmatpush1.bf16.msra.mxu0 %v1050_v20  ;;  %v1008_v19 = vpack.c.bf16 %v490_v12, %v488_v11  ;;  %v1072_v20 = vpack.c.bf16 %v554_v14, %v552_v13  ;;  %v279_v11 = vsub.s32 0, %v278_v10  ;;  %v287_v12 = vsub.s32 2, %v278_v10  ;;  %v275_v13 = vld [vmem:[%s1846_s6] sm:$0xf] }
 0x1cd   :  { %989 = vmatprep.subr.bf16.mxu1 %v988_v23  ;;  %1053 = vmatprep.subr.bf16.mxu0 %v1052_v24  ;;  %v492_v23 = vld [vmem:[%s1844_s7 + $0x188] sm:$0xff]  ;;  %v494_v24 = vld [vmem:[%s1844_s7 + $0x198] sm:$0xff]  ;;  %v283_v14 = vsub.s32 1, %v278_v10 }
 0x1ce   :  { %v288_v17 = vrot.slane %v275_v13, %v287_v12 }
 0x1cf   :  { %v284_v18 = vrot.slane %v275_v13, %v283_v14 }
 0x1d0   :  { %991 = vmatpush1.bf16.msra.mxu1 %v990_v31  ;;  %1055 = vmatpush1.bf16.msra.mxu0 %v1054_v32  ;;  %v1012_v31 = vpack.c.bf16 %v494_v24, %v492_v23  ;;  %v1076_v32 = vpack.c.bf16 %v558_v26, %v556_v25 }
 0x1d1   :  { %993 = vmatprep.subr.bf16.mxu1 %v992_v34  ;;  %1057 = vmatprep.subr.bf16.mxu0 %v1056_v35  ;;  %v496_v34 = vld [vmem:[%s1844_s7 + $0x1a8] sm:$0xff]  ;;  %v498_v35 = vld [vmem:[%s1844_s7 + $0x1b8] sm:$0xff] }
 0x1d4   :  { %995 = vmatpush1.bf16.msra.mxu1 %v994_v42  ;;  %1059 = vmatpush1.bf16.msra.mxu0 %v1058_v43  ;;  %v1016_v42 = vpack.c.bf16 %v498_v35, %v496_v34  ;;  %v1080_v43 = vpack.c.bf16 %v562_v37, %v560_v36 }
 0x1d5   :  { %997 = vmatprep.subr.bf16.mxu1 %v996_v46  ;;  %1061 = vmatprep.subr.bf16.mxu0 %v1060_v47  ;;  %v500_v46 = vld [vmem:[%s1844_s7 + $0x1c8] sm:$0xff]  ;;  %v502_v47 = vld [vmem:[%s1844_s7 + $0x1d8] sm:$0xff] }
 0x1d6   :  { %v1020_v52 = vpack.c.bf16 %v502_v47, %v500_v46 }
 0x1d8   :  { %999 = vmatpush1.bf16.msra.mxu1 %v998_v54  ;;  %1063 = vmatpush1.bf16.msra.mxu0 %v1062_v55  ;;  %v499_v54 = vld [vmem:[%s1844_s7 + $0x1c0] sm:$0xff]  ;;  %v501_v55 = vld [vmem:[%s1844_s7 + $0x1d0] sm:$0xff] }
 0x1d9   :  { %1001 = vmatprep.subr.bf16.mxu1 %v1000_v58  ;;  %1065 = vmatprep.subr.bf16.mxu0 %v1064_v59  ;;  %v1022_v57 = vpack.c.bf16 %v501_v55, %v499_v54  ;;  %v565_v58 = vld [vmem:[%s1844_s7 + $0x3d0] sm:$0xff] }
 0x1da   :  { %v1086_v59 = vpack.c.bf16 %v565_v58, %v563_v56 }
 0x1dc   :  { %1003 = vmatpush1.bf16.msra.mxu1 %v1002_v2  ;;  %1067 = vmatpush1.bf16.msra.mxu0 %v1066_v4  ;;  %v505_v2 = vld [vmem:[%s1844_s7 + $0x1f0] sm:$0xff]  ;;  %v1088_v4 = vpack.c.bf16 %v570_v0, %v568_v62 }
 0x1dd   :  { %1005 = vmatprep.subr.bf16.mxu1 %v1004_v7  ;;  %1069 = vmatprep.subr.bf16.mxu0 %v1068_v8  ;;  %v1026_v5 = vpack.c.bf16 %v505_v2, %v503_v1  ;;  %v569_v7 = vld [vmem:[%s1844_s7 + $0x3f0] sm:$0xff] }
 0x1de   :  { %v1090_v8 = vpack.c.bf16 %v569_v7, %v567_v6 }
 0x1e0   :  { %1007 = vmatpush1.bf16.msra.mxu1 %v1006_v15  ;;  %1071 = vmatpush1.bf16.msra.mxu0 %v1070_v16  ;;  %v291_v15 = vsub.s32 3, %v278_v10  ;;  %v280_v16 = vrot.slane %v275_v13, %v279_v11 }
 0x1e1   :  { %1009 = vmatprep.subr.bf16.mxu1 %v1008_v19  ;;  %1073 = vmatprep.subr.bf16.mxu0 %v1072_v20 }
 0x1e2   :  { %v292_v19 = vrot.slane %v275_v13, %v291_v15 }
 0x1e4   :  { %1011 = vmatpush1.bf16.msra.mxu1 %v1010_v27  ;;  %1075 = vmatpush1.bf16.msra.mxu0 %v1074_v28 }
 0x1e5   :  { %1013 = vmatprep.subr.bf16.mxu1 %v1012_v31  ;;  %1077 = vmatprep.subr.bf16.mxu0 %v1076_v32  ;;  %v571_v32 = vld [vmem:[%s1847_s8] sm:$0x3]  ;;  %s1123_s8 = smov 77  }
 0x1e6   :  { %v576_v3 = vrot.slane %v571_v32, %v279_v11  ;;  %v580_v33 = vrot.slane %v571_v32, %v283_v14 }
 0x1e8   :  { %1015 = vmatpush1.bf16.msra.mxu1 %v1014_v38  ;;  %1079 = vmatpush1.bf16.msra.mxu0 %v1078_v39 }
 0x1e9   :  { %1017 = vmatprep.subr.bf16.mxu1 %v1016_v42  ;;  %1081 = vmatprep.subr.bf16.mxu0 %v1080_v43 }
 0x1ec   :  { %1019 = vmatpush1.bf16.msra.mxu1 %v1018_v50  ;;  %1083 = vmatpush1.bf16.msra.mxu0 %v1082_v51 }
 0x1ed   :  { %1021 = vmatprep.subr.bf16.mxu1 %v1020_v52  ;;  %1085 = vmatprep.subr.bf16.mxu0 %v1084_v53 }
 0x1f0   :  { %1023 = vmatpush1.bf16.msra.mxu1 %v1022_v57  ;;  %1087 = vmatpush1.bf16.msra.mxu0 %v1086_v59 }
 0x1f1   :  { %1025 = vmatprep.subr.bf16.mxu1 %v1024_v63  ;;  %1089 = vmatprep.subr.bf16.mxu0 %v1088_v4 }
 0x1f4   :  { %1027 = vmatpush1.bf16.msra.mxu1 %v1026_v5  ;;  %1091 = vmatpush1.bf16.msra.mxu0 %v1090_v8 }
 0x28a   :  { %v363_v20 = vpop.f32.mrb[2].mxu0  ;;  %v434_v21 = vpop.f32.mrb[2].mxu1 }
 0x28b   :  { %v364_v22 = vadd.f32 %v363_v20, %v280_v16  ;;  %v435_v23 = vadd.f32 %v434_v21, %v288_v17  ;;  %v365_v24 = vpop.f32.mrb[3].mxu0  ;;  %v436_v25 = vpop.f32.mrb[3].mxu1 }
 0x28c   :  { %v366_v26 = vadd.f32 %v365_v24, %v284_v18  ;;  %v437_v27 = vadd.f32 %v436_v25, %v292_v19 }
 0x28d   :  { %v439_v30 = vmax.f32 %v364_v22, 0.0  ;;  %v441_v31 = vmax.f32 %v435_v23, 0.0 }
 0x28e   :  { %v440_v28 = vmax.f32 %v366_v26, 0.0  ;;  %v442_v29 = vmax.f32 %v437_v27, 0.0 }
 0x290   :  { %647 = vmatprep.mubr.f32.mxu1 %v440_v28  ;;  %718 = vmatprep.mubr.f32.mxu0 %v442_v29 }
 0x291   :  { %648 = vmatmul.mubr.f32.vlgmr.msra.gmra.mrb[4].mxu1 %v439_v30  ;;  %719 = vmatmul.mubr.f32.vlgmr.msra.gmra.mrb[4].mxu0 %v441_v31 }
 0x364   :  { %v649_v34 = vpop.f32.mrb[4].mxu1  ;;  %v720_v35 = vpop.f32.mrb[4].mxu0 }
 0x365   :  { %v650_v36 = vadd.f32 %v649_v34, %v576_v3  ;;  %v651_v37 = vpop.f32.mrb[5].mxu1  ;;  %v722_v38 = vpop.f32.mrb[5].mxu0 }
 0x366   :  { %v652_v39 = vadd.f32 %v651_v37, %v580_v33 }
 0x367   :  { %v721_v40 = vadd.f32 %v720_v35, %v650_v36 }
 0x368   :  { %v723_v41 = vadd.f32 %v722_v38, %v652_v39 }
 0x369   :  { %v738_v42 = vsel %vm737_vm2, %v721_v40, -inf  ;;  %v754_v43 = vsel %vm753_vm3, %v721_v40, -inf  ;;  %v726_v47 = vsel %vm725_vm6, %v721_v40, -inf }
 0x36a   :  { %739 = vmax.xlane.f32.xlu0 %v738_v42  ;;  %v782_v44 = vsel %vm781_vm4, %v723_v41, -inf  ;;  %v756_v45 = vsel %vm755_vm5, %v723_v41, -inf }
 0x36b   :  { %783 = vmax.xlane.f32.xlu1 %v782_v44  ;;  %v757_v46 = vmax.f32 %v754_v43, %v756_v45 }
 0x36e   :  { %758 = vmax.xlane.f32.xlu0 %v757_v46 }
 0x36f   :  { %727 = vmax.xlane.f32.xlu1 %v726_v47 }
 0x3f7   :  { %v740_v48 = vpop.xlane.xlu0 %739 }
 0x3f8   :  { %v741_v49 = vsub.f32 %v721_v40, %v740_v48  ;;  %v784_v54 = vpop.xlane.xlu1 %783 }
 0x3f9   :  { %v785_v56 = vsub.f32 %v723_v41, %v784_v54 }
 0x3fa   :  { %v742_v50 = vmul.f32 1.442695, %v741_v49 }
 0x3fb   :  { %v759_v51 = vpop.xlane.xlu0 %758  ;;  %v786_v58 = vmul.f32 1.442695, %v785_v56 }
 0x3fc   :  { %1102 = vpow2.f32 %v742_v50  ;;  %v760_v52 = vsub.f32 %v721_v40, %v759_v51  ;;  %v761_v53 = vsub.f32 %v723_v41, %v759_v51  ;;  %v728_v61 = vpop.xlane.xlu1 %727 }
 0x3fd   :  { %v729_v63 = vsub.f32 %v721_v40, %v728_v61 }
 0x3fe   :  { %v762_v55 = vmul.f32 1.442695, %v760_v52  ;;  %v764_v57 = vmul.f32 1.442695, %v761_v53 }
 0x3ff   :  { %v730_v1 = vmul.f32 1.442695, %v729_v63 }
 0x400   :  { %1104 = vpow2.f32 %v762_v55 }
 0x401   :  { %1106 = vpow2.f32 %v764_v57 }
 0x402   :  { %1108 = vpow2.f32 %v786_v58 }
 0x403   :  { %1110 = vpow2.f32 %v730_v1 }
 0x406   :  { %v1103_v59 = vpop.eup %1102 }
 0x407   :  { %745 = vrot.lane.b32.xlu0 %v1103_v59, %s1123_s8 }
 0x40a   :  { %v1105_v60 = vpop.eup %1104 }
 0x40b   :  { %768 = vrot.lane.b32.xlu1 %v1105_v60, %s1124_s21  ;;  %v1107_v62 = vpop.eup %1106 }
 0x40c   :  { %v1109_v0 = vpop.eup %1108 }
 0x40d   :  { %v1111_v2 = vpop.eup %1110 }
 0x40e   :  { %v732_v4 = vsel %vm725_vm6, %v1111_v2, 0.0 }
 0x40f   :  { %770 = vrot.lane.b32.xlu1 %v1107_v62, %s1124_s21 }
 0x413   :  { %789 = vrot.lane.b32.xlu1 %v1109_v0, %s1125_s22 }
 0x426   :  { %733 = vadd.xlane.f32.xlu0 %v732_v4 }
 0x479   :  { %v746_v5 = vpop.permute.xlu0 %745 }
 0x47a   :  { %v748_v6 = vsel %vm725_vm6, %v746_v5, 0.0 }
 0x47b   :  { %749 = vadd.xlane.f32.xlu1 %v748_v6 }
 0x47d   :  { %v769_v7 = vpop.permute.xlu1 %768 }
 0x481   :  { %v771_v8 = vpop.permute.xlu1 %770 }
 0x482   :  { %v773_v9 = vsel %vm772_vm7, %v769_v7, %v771_v8 }
 0x483   :  { %v775_v10 = vsel %vm725_vm6, %v773_v9, 0.0 }
 0x484   :  { %776 = vadd.xlane.f32.xlu0 %v775_v10 }
 0x485   :  { %v790_v11 = vpop.permute.xlu1 %789 }
 0x486   :  { %v792_v12 = vsel %vm725_vm6, %v790_v11, 0.0 }
 0x488   :  { %793 = vadd.xlane.f32.xlu0 %v792_v12 }
 0x4b3   :  { %v734_v14 = vpop.xlane.xlu0 %733 }
 0x508   :  { %v750_v13 = vpop.xlane.xlu1 %749 }
 0x509   :  { %1112 = vrcp.f32 %v750_v13 }
 0x50a   :  { %1114 = vrcp.f32 %v734_v14 }
 0x511   :  { %v777_v15 = vpop.xlane.xlu0 %776 }
 0x512   :  { %1116 = vrcp.f32 %v777_v15 }
 0x513   :  { %v1113_v17 = vpop.eup %1112 }
 0x514   :  { %v1115_v18 = vpop.eup %1114  ;;  %v752_v19 = vmul.f32 %v1113_v17, %v1103_v59 }
 0x515   :  { %v794_v16 = vpop.xlane.xlu0 %793  ;;  %v736_v21 = vmul.f32 %v1115_v18, %v1111_v2 }
 0x516   :  { %1118 = vrcp.f32 %v794_v16 }
 0x517   :  { %v797_v23 = vsel %vm725_vm6, %v736_v21, %v752_v19 }
 0x51c   :  { %v1117_v20 = vpop.eup %1116 }
 0x51d   :  { %v779_v22 = vmul.f32 %v1117_v20, %v1105_v60  ;;  %v780_v26 = vmul.f32 %v1117_v20, %v1107_v62 }
 0x51f   :  { %v799_v24 = vsel %vm798_vm8, %v797_v23, %v779_v22 }
 0x520   :  { %v1119_v25 = vpop.eup %1118  ;;  %801 = vst [vmem:[%s1848_s9] sm:$0xff] %v799_v24 }
 0x521   :  { %v796_v27 = vmul.f32 %v1119_v25, %v1109_v0 }
 0x523   :  { %v800_v28 = vsel %vm755_vm5, %v780_v26, %v796_v27 }
 0x524   :  { %803 = vst.msk [vmem:[%s1848_s9 + $0x8] sm:$0xff] %vm802_vm9, %v800_v28 }

</bundles_post_ra>
